<compile_context>
chip_gen: v5e
topology: v5e:2x2
jax: 0.10.0
libtpu: 0.0.40
codegen_flags: <defaults>
</compile_context>

<pallas_src>
import functools

import jax
import jax.numpy as jnp
from jax.experimental import pallas as pl
from jax.experimental.pallas import tpu as pltpu

EMBED_DIMENSION = 300
EMBED_MAX_NORM = 1.0


def _skipgram_matmul_kernel(x_ref, w_ref, b_ref, o_ref):
    # x_ref: (B_pad, D)      renormalized embedding rows (compute dtype)
    # w_ref: (D, tile_v)     slab of the (D, V) weight -- no per-step transpose
    # b_ref: (1, tile_v)     bias slice (f32)
    # o_ref: (B_pad, tile_v) logits slice (f32)
    o_ref[...] = (
        jnp.dot(x_ref[...], w_ref[...], preferred_element_type=jnp.float32)
        + b_ref[...]
    )


def prepare_linear_weight(lin_weight, weight_dtype=jnp.bfloat16):
    """One-time layout change: PyTorch (V, D) weight -> (D, V) stream layout.

    bf16 by default: halves the HBM W stream (the roofline at small batch);
    accumulation inside the kernel stays f32.
    """
    return jnp.asarray(lin_weight).T.astype(weight_dtype)


def _choose_tile_v(V, tile_v, min_steps=8):
    # Multiple of 128 (lane-dense output stores); shrink for small vocabs so
    # the grid keeps >= min_steps steps (>= 4 per v7x TensorCore).
    t = max(128, (int(tile_v) // 128) * 128)
    while t > 128 and -(-V // t) < min_steps:
        t = max(128, ((t // 2) // 128) * 128)
    return t


def _vmem_capacity_bytes():
    try:
        cap = getattr(pltpu.get_tpu_info(), "vmem_capacity_bytes", None)
        if cap:
            return int(cap)
    except Exception:
        pass
    return 64 * 1024 * 1024  # conservative: v7x per-TensorCore physical VMEM


@functools.partial(jax.jit, static_argnames=("tile_v",))
def skipgram_forward(ids, emb_table, lin_weight_t, lin_bias, *, tile_v=2048):
    """ids: (B,) int32; emb_table: (V, D); lin_weight_t: (D, V) (see
    prepare_linear_weight); lin_bias: (V,). Returns (B, V) f32 logits."""
    D, V = lin_weight_t.shape
    B = ids.shape[0]
    w_dtype = lin_weight_t.dtype

    tile_eff = _choose_tile_v(V, tile_v)
    V_pad = pl.cdiv(V, tile_eff) * tile_eff
    if V_pad != V:  # pad vocab with zero weight columns / zero bias, slice later
        lin_weight_t = jnp.pad(lin_weight_t, ((0, 0), (0, V_pad - V)))
        lin_bias = jnp.pad(lin_bias, (0, V_pad - V))

    # --- glue: gather + max_norm renorm (hoisted out of the per-step body) ---
    x = jnp.take(emb_table, ids, axis=0).astype(jnp.float32)          # (B, D)
    # nn.Embedding(max_norm=1): if ||row||_2 > max_norm, scale by
    # max_norm / (||row||_2 + 1e-7)  (matches torch.embedding_renorm_).
    norm = jnp.sqrt(jnp.sum(x * x, axis=-1, keepdims=True))
    scale = jnp.where(norm > EMBED_MAX_NORM,
                      EMBED_MAX_NORM / (norm + 1e-7),
                      jnp.ones_like(norm))
    x = (x * scale).astype(w_dtype)                                   # feed MXU in stream dtype
    B_pad = ((B + 7) // 8) * 8
    if B_pad != B:
        x = jnp.pad(x, ((0, B_pad - B), (0, 0)))
    bias2d = lin_bias.astype(jnp.float32).reshape(1, V_pad)

    # --- explicit, generation-aware VMEM budget (includes layout padding) ---
    itemsize = jnp.dtype(w_dtype).itemsize
    d_lane = pl.cdiv(D, 128) * 128                 # x last-dim lane pad (300 -> 384)
    sub = (8 * 4) // itemsize                      # sublane pack: 8 (f32) / 16 (bf16)
    d_sub = pl.cdiv(D, sub) * sub                  # W sublane pad (300 -> 304)
    need_bytes = (2 * B_pad * d_lane * itemsize        # x tile, double-buffered
                  + 2 * d_sub * tile_eff * itemsize    # W tile, double-buffered
                  + 2 * 8 * tile_eff * 4               # bias tile
                  + 2 * B_pad * tile_eff * 4)          # output tile
    vmem_limit = int(min(max(2 * need_bytes, 32 * 1024 * 1024),
                         int(0.6 * _vmem_capacity_bytes())))

    grid = (V_pad // tile_eff,)
    out = pl.pallas_call(
        _skipgram_matmul_kernel,
        out_shape=jax.ShapeDtypeStruct((B_pad, V_pad), jnp.float32),
        grid_spec=pltpu.PrefetchScalarGridSpec(
            num_scalar_prefetch=0,
            grid=grid,
            in_specs=[
                pl.BlockSpec((B_pad, D), lambda j: (0, 0)),       # activations (resident)
                pl.BlockSpec((D, tile_eff), lambda j: (0, j)),    # W slab, (D, V) layout
                pl.BlockSpec((1, tile_eff), lambda j: (0, j)),    # bias slice
            ],
            out_specs=pl.BlockSpec((B_pad, tile_eff), lambda j: (0, j)),
        ),
        compiler_params=pltpu.CompilerParams(
            dimension_semantics=("parallel",),
            vmem_limit_bytes=vmem_limit,
        ),
    )(x, lin_weight_t, bias2d)
    return out[:B, :V]


def _reference(ids, emb_table, lin_weight, lin_bias):
    x = jnp.take(emb_table, ids, axis=0)
    norm = jnp.linalg.norm(x, axis=-1, keepdims=True)
    scale = jnp.where(norm > EMBED_MAX_NORM, EMBED_MAX_NORM / (norm + 1e-7), 1.0)
    x = x * scale
    return x @ lin_weight.T + lin_bias


if __name__ == "__main__":
    # TODO(synk): PyTorch's Embedding(max_norm=...) renormalizes the table
    # in-place during forward (stateful); this functional kernel renormalizes
    # only the gathered rows per call (per-call logits match).
    VOCAB = 4000          # deliberately NOT a tile multiple (exercises V padding)
    B = 8                 # real pipelines should batch more pairs per call to
                          # amortize the W stream (kernel supports any B)
    D = EMBED_DIMENSION

    key = jax.random.PRNGKey(0)
    k_emb, k_w, k_b, k_ids = jax.random.split(key, 4)

    # nn.Embedding default init: N(0, 1); nn.Linear default: U(-1/sqrt(D), 1/sqrt(D))
    emb_table = jax.random.normal(k_emb, (VOCAB, D), dtype=jnp.float32)
    bound = 1.0 / jnp.sqrt(jnp.float32(D))
    lin_weight = jax.random.uniform(k_w, (VOCAB, D), minval=-bound, maxval=bound,
                                    dtype=jnp.float32)
    lin_bias = jax.random.uniform(k_b, (VOCAB,), minval=-bound, maxval=bound,
                                  dtype=jnp.float32)
    ids = jax.random.randint(k_ids, (B,), 0, VOCAB, dtype=jnp.int32)

    ref = _reference(ids, emb_table, lin_weight, lin_bias)

    # f32 weight stream: bit-tight check against the PyTorch-style reference.
    w_t_f32 = prepare_linear_weight(lin_weight, jnp.float32)
    out_f32 = jax.block_until_ready(
        skipgram_forward(ids, emb_table, w_t_f32, lin_bias))
    assert out_f32.shape == (B, VOCAB), out_f32.shape
    assert jnp.allclose(out_f32, ref, atol=1e-4, rtol=1e-4), \
        float(jnp.max(jnp.abs(out_f32 - ref)))

    # bf16 weight stream (default): ~2x less HBM traffic on the W stream,
    # f32 accumulation; loosened tolerance vs. the f32 reference.
    w_t_bf16 = prepare_linear_weight(lin_weight)          # bf16
    out_bf16 = jax.block_until_ready(
        skipgram_forward(ids, emb_table, w_t_bf16, lin_bias))
    assert out_bf16.shape == (B, VOCAB), out_bf16.shape
    assert jnp.allclose(out_bf16, ref, atol=2e-2, rtol=2e-2), \
        float(jnp.max(jnp.abs(out_bf16 - ref)))

    print("KERNEL_OK")
</pallas_src>

<mosaic_0001>
module attributes {stable_mosaic.version = 11 : i64} {
  func.func @_skipgram_matmul_kernel(%arg0: i32, %arg1: memref<8x300xf32, #tpu.memory_space<vmem>>, %arg2: memref<300x512xf32, #tpu.memory_space<vmem>>, %arg3: memref<1x512xf32, #tpu.memory_space<vmem>>, %arg4: memref<8x512xf32, #tpu.memory_space<vmem>>) attributes {dimension_semantics = [#tpu.dimension_semantics<parallel>], iteration_bounds = array<i64: 8>, scalar_prefetch = 0 : i64, scratch_operands = 0 : i64, tpu.core_type = #tpu.core_type<tc>, window_params = [{pipeline_mode = #tpu.pipeline_mode<synchronous>, transform_indices = @transform_0, window_bounds = array<i64: 8, 300>}, {transform_indices = @transform_1, window_bounds = array<i64: 300, 512>}, {transform_indices = @transform_2, window_bounds = array<i64: 1, 512>}, {transform_indices = @transform_3, window_bounds = array<i64: 8, 512>}]} {
    %c0 = arith.constant 0 : index
    %c0_0 = arith.constant 0 : index
    %0 = vector.load %arg1[%c0, %c0_0] : memref<8x300xf32, #tpu.memory_space<vmem>>, vector<8x300xf32>
    %c0_1 = arith.constant 0 : index
    %c0_2 = arith.constant 0 : index
    %1 = vector.load %arg2[%c0_1, %c0_2] : memref<300x512xf32, #tpu.memory_space<vmem>>, vector<300x512xf32>
    %cst = arith.constant dense<0.000000e+00> : vector<8x512xf32>
    %2 = tpu.matmul %0, %1, %cst {dimension_numbers = #tpu.dot_dimension_numbers<[1], [0], [0], [1], [0, 0, 1, 1], [], []>} : vector<8x300xf32>, vector<300x512xf32>, vector<8x512xf32> -> vector<8x512xf32>
    %c0_3 = arith.constant 0 : index
    %c0_4 = arith.constant 0 : index
    %3 = vector.load %arg3[%c0_3, %c0_4] : memref<1x512xf32, #tpu.memory_space<vmem>>, vector<1x512xf32>
    %4 = vector.broadcast %3 : vector<1x512xf32> to vector<8x512xf32>
    %5 = arith.addf %2, %4 : vector<8x512xf32>
    %c0_5 = arith.constant 0 : index
    %c0_6 = arith.constant 0 : index
    %6 = vector.load %arg4[%c0_5, %c0_6] : memref<8x512xf32, #tpu.memory_space<vmem>>, vector<8x512xf32>
    tpu.vector_store %arg4[%c0_5, %c0_6], %5 {strides = array<i32>} : memref<8x512xf32, #tpu.memory_space<vmem>>, vector<8x512xf32>,
    return
  }
  func.func @transform_0(%arg0: i32) -> (i32, i32) {
    %c0_i32 = arith.constant 0 : i32
    %c0_i32_0 = arith.constant 0 : i32
    %c0_i32_1 = arith.constant 0 : i32
    return %c0_i32, %c0_i32_0 : i32, i32
  }
  func.func @transform_1(%arg0: i32) -> (i32, i32) {
    %c0_i32 = arith.constant 0 : i32
    %c0_i32_0 = arith.constant 0 : i32
    return %c0_i32, %arg0 : i32, i32
  }
  func.func @transform_2(%arg0: i32) -> (i32, i32) {
    %c0_i32 = arith.constant 0 : i32
    %c0_i32_0 = arith.constant 0 : i32
    return %c0_i32, %arg0 : i32, i32
  }
  func.func @transform_3(%arg0: i32) -> (i32, i32) {
    %c0_i32 = arith.constant 0 : i32
    %c0_i32_0 = arith.constant 0 : i32
    return %c0_i32, %arg0 : i32, i32
  }
}

</mosaic_0001>

<bundles_post_ra>
// kernel: skipgram_forward.1
= control target key start
LH: loop header
LB: loop body
LE: loop exit
PB: predicated region body
PF: predicated region fallthrough
CT: control target
= control target key end

     0   :  { %8 = vsyncpa [#allocation4], 0  ;;  %s1770_s0 = inlined_call_operand.vmem [shape: f32[8,300], index: 0, kind: input, shape index: {}]   ;;  %s1771_s1 = inlined_call_operand.vmem [shape: f32[300,4096], index: 1, kind: input, shape index: {}]   ;;  %s1772_s2 = inlined_call_operand.vmem [shape: f32[1,4096], index: 2, kind: input, shape index: {}]   ;;  %s1773_s3 = inlined_call_operand.hbm [shape: f32[8,4096], index: 3, kind: output, shape index: {}]  }
   0x1   :  { %10 = vsyncpa [#allocation4 + $0x1], 0  ;;  %s1177_s12 = smov 0   ;;  %s1179_s13 = smov 0  }
   0x2   :  { %s1181_s14 = smov 0   ;;  %s1183_s15 = smov 0  }
   0x3 LB: > { %s1198_s16 = sadd.s32 4294967295, %s1155_s15   ;;  %s1029_s17 = sadd.s32 4294967294, %s1155_s15   ;;  %s1155_s15 = sphi %s1183_s15, %s1779_s15   ;;  %s1151_s14 = sphi %s1181_s14, %s1778_s14   ;;  %s1147_s13 = sphi %s1179_s13, %s1777_s13   ;;  %s1143_s12 = sphi %s1177_s12, %s1776_s12  }
   0x4   : > { %s1202_s18 = sadd.s32 1, %s1155_s15   ;;  %s44_s19 = sadd.s32 1, %s1151_s14 }
   0x5   : > { %s41_s20 = ssub.s32 %s1155_s15, %s1202_s18  ;;  %p51_p0 = scmp.ne.s32.totalorder %s1151_s14, %s1147_s13 }
   0x6   : > { %p42_p1 = scmp.eq.s32.totalorder %s41_s20, 0  ;;  %p52_p2 = scmp.eq.s32.totalorder %s1155_s15, 0 }
   0x7   : > { %p107_p3 = scmp.eq.s32.totalorder %s1198_s16, 7  ;;  %p112_p4 = scmp.ne.s32.totalorder %s1147_s13, %s1143_s12 }
   0x8   : > { %s1214_s21 = scalar_select %p42_p1, %s1151_s14, %s44_s19  }
   0x9   : > { %p53_p5 = por %p52_p2, %p51_p0  ;;  %p1216_p6 = por %p107_p3, %p51_p0 }
   0xa   : > { %p113_p7 = scmp.eq.s32.totalorder %s1029_s17, 7  ;;  %p1031_p9 = scmp.ge.s32.totalorder %s1155_s15, 8 }
   0xc   : > { %p1220_p8 = por %p113_p7, %p112_p4  ;;  %132 = sbr.rel (%p1031_p9) target bundleno = 173 (0xad), region = 20 }
  0x11   : > { %135 = sbr.rel (!%p53_p5) target bundleno = 173 (0xad), region = 24  ;;  %s137_s24 = sand.u32 (%p53_p5), 1, %s1151_s14  }
  0x12   : > { %s1050_s25 = sshll.u32 (%p53_p5), %s1155_s15, 5  ;;  %s1052_s26 = smul.u32 (%p53_p5), 1216, %s137_s24 }
  0x13   : > { %s1230_s29 = scalar_lea.vmem (%p53_p5), %s1771_s1, %s1050_s25 }
  0x14   : > { %v155_v0 = vld [vmem:[%s1230_s29] sm:$0xff] (%p53_p5)  ;;  %v157_v1 = vld [vmem:[%s1230_s29 + $0x8] sm:$0xff] (%p53_p5)  ;;  %v159_v2 = vld [vmem:[%s1230_s29 + $0x10] sm:$0xff] (%p53_p5)  ;;  %s1235_s30 = scalar_lea.vmem (%p53_p5), [#allocation2], %s1052_s26 }
  0x15   : > { %156 = vst [vmem:[%s1235_s30] sm:$0xff] (%p53_p5), %v155_v0  ;;  %v161_v3 = vld [vmem:[%s1230_s29 + $0x18] sm:$0xff] (%p53_p5)  ;;  %v163_v4 = vld [vmem:[%s1230_s29 + $0x100] sm:$0xff] (%p53_p5)  ;;  %v165_v5 = vld [vmem:[%s1230_s29 + $0x108] sm:$0xff] (%p53_p5) }
  0x16   : > { %158 = vst [vmem:[%s1235_s30 + $0x8] sm:$0xff] %v157_v1  ;;  %v167_v6 = vld [vmem:[%s1230_s29 + $0x110] sm:$0xff]  ;;  %v169_v7 = vld [vmem:[%s1230_s29 + $0x118] sm:$0xff]  ;;  %v171_v8 = vld [vmem:[%s1230_s29 + $0x200] sm:$0xff] }
  0x17   : > { %160 = vst [vmem:[%s1235_s30 + $0x10] sm:$0xff] %v159_v2  ;;  %v173_v9 = vld [vmem:[%s1230_s29 + $0x208] sm:$0xff]  ;;  %v175_v10 = vld [vmem:[%s1230_s29 + $0x210] sm:$0xff]  ;;  %v177_v11 = vld [vmem:[%s1230_s29 + $0x218] sm:$0xff] }
  0x18   : > { %162 = vst [vmem:[%s1235_s30 + $0x18] sm:$0xff] %v161_v3  ;;  %v179_v12 = vld [vmem:[%s1230_s29 + $0x300] sm:$0xff]  ;;  %v181_v13 = vld [vmem:[%s1230_s29 + $0x308] sm:$0xff]  ;;  %v183_v14 = vld [vmem:[%s1230_s29 + $0x310] sm:$0xff] }
  0x19   : > { %164 = vst [vmem:[%s1235_s30 + $0x20] sm:$0xff] %v163_v4  ;;  %v185_v15 = vld [vmem:[%s1230_s29 + $0x318] sm:$0xff]  ;;  %v187_v16 = vld [vmem:[%s1230_s29 + $0x400] sm:$0xff]  ;;  %v189_v17 = vld [vmem:[%s1230_s29 + $0x408] sm:$0xff] }
  0x1a   : > { %166 = vst [vmem:[%s1235_s30 + $0x28] sm:$0xff] %v165_v5  ;;  %v191_v18 = vld [vmem:[%s1230_s29 + $0x410] sm:$0xff]  ;;  %v193_v19 = vld [vmem:[%s1230_s29 + $0x418] sm:$0xff]  ;;  %v195_v20 = vld [vmem:[%s1230_s29 + $0x500] sm:$0xff] }
  0x1b   : > { %168 = vst [vmem:[%s1235_s30 + $0x30] sm:$0xff] %v167_v6  ;;  %v197_v21 = vld [vmem:[%s1230_s29 + $0x508] sm:$0xff]  ;;  %v199_v22 = vld [vmem:[%s1230_s29 + $0x510] sm:$0xff]  ;;  %v201_v23 = vld [vmem:[%s1230_s29 + $0x518] sm:$0xff] }
  0x1c   : > { %170 = vst [vmem:[%s1235_s30 + $0x38] sm:$0xff] %v169_v7  ;;  %v203_v24 = vld [vmem:[%s1230_s29 + $0x600] sm:$0xff]  ;;  %v205_v25 = vld [vmem:[%s1230_s29 + $0x608] sm:$0xff]  ;;  %v207_v26 = vld [vmem:[%s1230_s29 + $0x610] sm:$0xff] }
  0x1d   : > { %172 = vst [vmem:[%s1235_s30 + $0x40] sm:$0xff] %v171_v8  ;;  %v209_v27 = vld [vmem:[%s1230_s29 + $0x618] sm:$0xff]  ;;  %v211_v28 = vld [vmem:[%s1230_s29 + $0x700] sm:$0xff]  ;;  %v213_v29 = vld [vmem:[%s1230_s29 + $0x708] sm:$0xff] }
  0x1e   : > { %174 = vst [vmem:[%s1235_s30 + $0x48] sm:$0xff] %v173_v9  ;;  %v215_v30 = vld [vmem:[%s1230_s29 + $0x710] sm:$0xff]  ;;  %v217_v31 = vld [vmem:[%s1230_s29 + $0x718] sm:$0xff]  ;;  %v219_v32 = vld [vmem:[%s1230_s29 + $0x800] sm:$0xff] }
  0x1f   : > { %176 = vst [vmem:[%s1235_s30 + $0x50] sm:$0xff] %v175_v10  ;;  %v221_v33 = vld [vmem:[%s1230_s29 + $0x808] sm:$0xff]  ;;  %v223_v34 = vld [vmem:[%s1230_s29 + $0x810] sm:$0xff]  ;;  %v225_v35 = vld [vmem:[%s1230_s29 + $0x818] sm:$0xff] }
  0x20   : > { %178 = vst [vmem:[%s1235_s30 + $0x58] sm:$0xff] %v177_v11  ;;  %v227_v36 = vld [vmem:[%s1230_s29 + $0x900] sm:$0xff]  ;;  %v229_v37 = vld [vmem:[%s1230_s29 + $0x908] sm:$0xff]  ;;  %v231_v38 = vld [vmem:[%s1230_s29 + $0x910] sm:$0xff] }
  0x21   : > { %180 = vst [vmem:[%s1235_s30 + $0x60] sm:$0xff] %v179_v12  ;;  %v233_v39 = vld [vmem:[%s1230_s29 + $0x918] sm:$0xff]  ;;  %v235_v40 = vld [vmem:[%s1230_s29 + $0xa00] sm:$0xff]  ;;  %v237_v41 = vld [vmem:[%s1230_s29 + $0xa08] sm:$0xff] }
  0x22   : > { %182 = vst [vmem:[%s1235_s30 + $0x68] sm:$0xff] %v181_v13  ;;  %v239_v42 = vld [vmem:[%s1230_s29 + $0xa10] sm:$0xff]  ;;  %v241_v43 = vld [vmem:[%s1230_s29 + $0xa18] sm:$0xff]  ;;  %v243_v44 = vld [vmem:[%s1230_s29 + $0xb00] sm:$0xff] }
  0x23   : > { %184 = vst [vmem:[%s1235_s30 + $0x70] sm:$0xff] %v183_v14  ;;  %v245_v45 = vld [vmem:[%s1230_s29 + $0xb08] sm:$0xff]  ;;  %v247_v46 = vld [vmem:[%s1230_s29 + $0xb10] sm:$0xff]  ;;  %v249_v47 = vld [vmem:[%s1230_s29 + $0xb18] sm:$0xff] }
  0x24   : > { %186 = vst [vmem:[%s1235_s30 + $0x78] sm:$0xff] %v185_v15  ;;  %v251_v48 = vld [vmem:[%s1230_s29 + $0xc00] sm:$0xff]  ;;  %v253_v49 = vld [vmem:[%s1230_s29 + $0xc08] sm:$0xff]  ;;  %v255_v50 = vld [vmem:[%s1230_s29 + $0xc10] sm:$0xff] }
  0x25   : > { %188 = vst [vmem:[%s1235_s30 + $0x80] sm:$0xff] %v187_v16  ;;  %v257_v51 = vld [vmem:[%s1230_s29 + $0xc18] sm:$0xff]  ;;  %v259_v52 = vld [vmem:[%s1230_s29 + $0xd00] sm:$0xff]  ;;  %v261_v53 = vld [vmem:[%s1230_s29 + $0xd08] sm:$0xff] }
  0x26   : > { %190 = vst [vmem:[%s1235_s30 + $0x88] sm:$0xff] %v189_v17  ;;  %v263_v54 = vld [vmem:[%s1230_s29 + $0xd10] sm:$0xff]  ;;  %v265_v55 = vld [vmem:[%s1230_s29 + $0xd18] sm:$0xff]  ;;  %v267_v56 = vld [vmem:[%s1230_s29 + $0xe00] sm:$0xff] }
  0x27   : > { %192 = vst [vmem:[%s1235_s30 + $0x90] sm:$0xff] %v191_v18  ;;  %v269_v57 = vld [vmem:[%s1230_s29 + $0xe08] sm:$0xff]  ;;  %v271_v58 = vld [vmem:[%s1230_s29 + $0xe10] sm:$0xff]  ;;  %v273_v59 = vld [vmem:[%s1230_s29 + $0xe18] sm:$0xff] }
  0x28   : > { %194 = vst [vmem:[%s1235_s30 + $0x98] sm:$0xff] %v193_v19  ;;  %v275_v60 = vld [vmem:[%s1230_s29 + $0xf00] sm:$0xff]  ;;  %v277_v61 = vld [vmem:[%s1230_s29 + $0xf08] sm:$0xff]  ;;  %v279_v62 = vld [vmem:[%s1230_s29 + $0xf10] sm:$0xff] }
  0x29   : > { %196 = vst [vmem:[%s1235_s30 + $0xa0] sm:$0xff] %v195_v20  ;;  %v281_v63 = vld [vmem:[%s1230_s29 + $0xf18] sm:$0xff]  ;;  %v283_v0 = vld [vmem:[%s1230_s29 + $0x1000] sm:$0xff]  ;;  %v285_v1 = vld [vmem:[%s1230_s29 + $0x1008] sm:$0xff] }
  0x2a   : > { %198 = vst [vmem:[%s1235_s30 + $0xa8] sm:$0xff] %v197_v21  ;;  %v287_v2 = vld [vmem:[%s1230_s29 + $0x1010] sm:$0xff]  ;;  %v289_v3 = vld [vmem:[%s1230_s29 + $0x1018] sm:$0xff]  ;;  %v291_v4 = vld [vmem:[%s1230_s29 + $0x1100] sm:$0xff] }
  0x2b   : > { %200 = vst [vmem:[%s1235_s30 + $0xb0] sm:$0xff] %v199_v22  ;;  %v293_v5 = vld [vmem:[%s1230_s29 + $0x1108] sm:$0xff]  ;;  %v295_v6 = vld [vmem:[%s1230_s29 + $0x1110] sm:$0xff]  ;;  %v297_v7 = vld [vmem:[%s1230_s29 + $0x1118] sm:$0xff] }
  0x2c   : > { %202 = vst [vmem:[%s1235_s30 + $0xb8] sm:$0xff] %v201_v23  ;;  %v299_v8 = vld [vmem:[%s1230_s29 + $0x1200] sm:$0xff]  ;;  %v301_v9 = vld [vmem:[%s1230_s29 + $0x1208] sm:$0xff]  ;;  %v303_v10 = vld [vmem:[%s1230_s29 + $0x1210] sm:$0xff] }
  0x2d   : > { %204 = vst [vmem:[%s1235_s30 + $0xc0] sm:$0xff] %v203_v24  ;;  %v305_v11 = vld [vmem:[%s1230_s29 + $0x1218] sm:$0xff]  ;;  %v307_v12 = vld [vmem:[%s1230_s29 + $0x1300] sm:$0xff]  ;;  %v309_v13 = vld [vmem:[%s1230_s29 + $0x1308] sm:$0xff] }
  0x2e   : > { %206 = vst [vmem:[%s1235_s30 + $0xc8] sm:$0xff] %v205_v25  ;;  %v311_v14 = vld [vmem:[%s1230_s29 + $0x1310] sm:$0xff]  ;;  %v313_v15 = vld [vmem:[%s1230_s29 + $0x1318] sm:$0xff]  ;;  %v315_v16 = vld [vmem:[%s1230_s29 + $0x1400] sm:$0xff] }
  0x2f   : > { %208 = vst [vmem:[%s1235_s30 + $0xd0] sm:$0xff] %v207_v26  ;;  %v317_v17 = vld [vmem:[%s1230_s29 + $0x1408] sm:$0xff]  ;;  %v319_v18 = vld [vmem:[%s1230_s29 + $0x1410] sm:$0xff]  ;;  %v321_v19 = vld [vmem:[%s1230_s29 + $0x1418] sm:$0xff] }
  0x30   : > { %210 = vst [vmem:[%s1235_s30 + $0xd8] sm:$0xff] %v209_v27  ;;  %v323_v20 = vld [vmem:[%s1230_s29 + $0x1500] sm:$0xff]  ;;  %v325_v21 = vld [vmem:[%s1230_s29 + $0x1508] sm:$0xff]  ;;  %v327_v22 = vld [vmem:[%s1230_s29 + $0x1510] sm:$0xff] }
  0x31   : > { %212 = vst [vmem:[%s1235_s30 + $0xe0] sm:$0xff] %v211_v28  ;;  %v329_v23 = vld [vmem:[%s1230_s29 + $0x1518] sm:$0xff]  ;;  %v331_v24 = vld [vmem:[%s1230_s29 + $0x1600] sm:$0xff]  ;;  %v333_v25 = vld [vmem:[%s1230_s29 + $0x1608] sm:$0xff] }
  0x32   : > { %214 = vst [vmem:[%s1235_s30 + $0xe8] sm:$0xff] %v213_v29  ;;  %v335_v26 = vld [vmem:[%s1230_s29 + $0x1610] sm:$0xff]  ;;  %v337_v27 = vld [vmem:[%s1230_s29 + $0x1618] sm:$0xff]  ;;  %v339_v28 = vld [vmem:[%s1230_s29 + $0x1700] sm:$0xff] }
  0x33   : > { %216 = vst [vmem:[%s1235_s30 + $0xf0] sm:$0xff] %v215_v30  ;;  %v341_v29 = vld [vmem:[%s1230_s29 + $0x1708] sm:$0xff]  ;;  %v343_v30 = vld [vmem:[%s1230_s29 + $0x1710] sm:$0xff] }
  0x34   : > { %218 = vst [vmem:[%s1235_s30 + $0xf8] sm:$0xff] %v217_v31  ;;  %v345_v31 = vld [vmem:[%s1230_s29 + $0x1718] sm:$0xff] }
  0x35   : > { %220 = vst [vmem:[%s1235_s30 + $0x100] sm:$0xff] %v219_v32  ;;  %v347_v32 = vld [vmem:[%s1230_s29 + $0x1800] sm:$0xff] }
  0x36   : > { %222 = vst [vmem:[%s1235_s30 + $0x108] sm:$0xff] %v221_v33  ;;  %v349_v33 = vld [vmem:[%s1230_s29 + $0x1808] sm:$0xff] }
  0x37   : > { %224 = vst [vmem:[%s1235_s30 + $0x110] sm:$0xff] %v223_v34  ;;  %v351_v34 = vld [vmem:[%s1230_s29 + $0x1810] sm:$0xff] }
  0x38   : > { %226 = vst [vmem:[%s1235_s30 + $0x118] sm:$0xff] %v225_v35  ;;  %v353_v35 = vld [vmem:[%s1230_s29 + $0x1818] sm:$0xff] }
  0x39   : > { %228 = vst [vmem:[%s1235_s30 + $0x120] sm:$0xff] %v227_v36  ;;  %v355_v36 = vld [vmem:[%s1230_s29 + $0x1900] sm:$0xff] }
  0x3a   : > { %230 = vst [vmem:[%s1235_s30 + $0x128] sm:$0xff] %v229_v37  ;;  %v357_v37 = vld [vmem:[%s1230_s29 + $0x1908] sm:$0xff] }
  0x3b   : > { %232 = vst [vmem:[%s1235_s30 + $0x130] sm:$0xff] %v231_v38  ;;  %v359_v38 = vld [vmem:[%s1230_s29 + $0x1910] sm:$0xff] }
  0x3c   : > { %234 = vst [vmem:[%s1235_s30 + $0x138] sm:$0xff] %v233_v39  ;;  %v361_v39 = vld [vmem:[%s1230_s29 + $0x1918] sm:$0xff] }
  0x3d   : > { %236 = vst [vmem:[%s1235_s30 + $0x140] sm:$0xff] %v235_v40  ;;  %v363_v40 = vld [vmem:[%s1230_s29 + $0x1a00] sm:$0xff] }
  0x3e   : > { %238 = vst [vmem:[%s1235_s30 + $0x148] sm:$0xff] %v237_v41  ;;  %v365_v41 = vld [vmem:[%s1230_s29 + $0x1a08] sm:$0xff] }
  0x3f   : > { %240 = vst [vmem:[%s1235_s30 + $0x150] sm:$0xff] %v239_v42  ;;  %v367_v42 = vld [vmem:[%s1230_s29 + $0x1a10] sm:$0xff] }
  0x40   : > { %242 = vst [vmem:[%s1235_s30 + $0x158] sm:$0xff] %v241_v43  ;;  %v369_v43 = vld [vmem:[%s1230_s29 + $0x1a18] sm:$0xff] }
  0x41   : > { %244 = vst [vmem:[%s1235_s30 + $0x160] sm:$0xff] %v243_v44  ;;  %v371_v44 = vld [vmem:[%s1230_s29 + $0x1b00] sm:$0xff] }
  0x42   : > { %246 = vst [vmem:[%s1235_s30 + $0x168] sm:$0xff] %v245_v45  ;;  %v373_v45 = vld [vmem:[%s1230_s29 + $0x1b08] sm:$0xff] }
  0x43   : > { %248 = vst [vmem:[%s1235_s30 + $0x170] sm:$0xff] %v247_v46  ;;  %v375_v46 = vld [vmem:[%s1230_s29 + $0x1b10] sm:$0xff] }
  0x44   : > { %250 = vst [vmem:[%s1235_s30 + $0x178] sm:$0xff] %v249_v47  ;;  %v377_v47 = vld [vmem:[%s1230_s29 + $0x1b18] sm:$0xff] }
  0x45   : > { %252 = vst [vmem:[%s1235_s30 + $0x180] sm:$0xff] %v251_v48  ;;  %v379_v48 = vld [vmem:[%s1230_s29 + $0x1c00] sm:$0xff] }
  0x46   : > { %254 = vst [vmem:[%s1235_s30 + $0x188] sm:$0xff] %v253_v49  ;;  %v381_v49 = vld [vmem:[%s1230_s29 + $0x1c08] sm:$0xff] }
  0x47   : > { %256 = vst [vmem:[%s1235_s30 + $0x190] sm:$0xff] %v255_v50  ;;  %v383_v50 = vld [vmem:[%s1230_s29 + $0x1c10] sm:$0xff] }
  0x48   : > { %258 = vst [vmem:[%s1235_s30 + $0x198] sm:$0xff] %v257_v51  ;;  %v385_v51 = vld [vmem:[%s1230_s29 + $0x1c18] sm:$0xff] }
  0x49   : > { %260 = vst [vmem:[%s1235_s30 + $0x1a0] sm:$0xff] %v259_v52  ;;  %v387_v52 = vld [vmem:[%s1230_s29 + $0x1d00] sm:$0xff] }
  0x4a   : > { %262 = vst [vmem:[%s1235_s30 + $0x1a8] sm:$0xff] %v261_v53  ;;  %v389_v53 = vld [vmem:[%s1230_s29 + $0x1d08] sm:$0xff] }
  0x4b   : > { %264 = vst [vmem:[%s1235_s30 + $0x1b0] sm:$0xff] %v263_v54  ;;  %v391_v54 = vld [vmem:[%s1230_s29 + $0x1d10] sm:$0xff] }
  0x4c   : > { %266 = vst [vmem:[%s1235_s30 + $0x1b8] sm:$0xff] %v265_v55  ;;  %v393_v55 = vld [vmem:[%s1230_s29 + $0x1d18] sm:$0xff] }
  0x4d   : > { %268 = vst [vmem:[%s1235_s30 + $0x1c0] sm:$0xff] %v267_v56  ;;  %v395_v56 = vld [vmem:[%s1230_s29 + $0x1e00] sm:$0xff] }
  0x4e   : > { %270 = vst [vmem:[%s1235_s30 + $0x1c8] sm:$0xff] %v269_v57  ;;  %v397_v57 = vld [vmem:[%s1230_s29 + $0x1e08] sm:$0xff] }
  0x4f   : > { %272 = vst [vmem:[%s1235_s30 + $0x1d0] sm:$0xff] %v271_v58  ;;  %v399_v58 = vld [vmem:[%s1230_s29 + $0x1e10] sm:$0xff] }
  0x50   : > { %274 = vst [vmem:[%s1235_s30 + $0x1d8] sm:$0xff] %v273_v59  ;;  %v401_v59 = vld [vmem:[%s1230_s29 + $0x1e18] sm:$0xff] }
  0x51   : > { %276 = vst [vmem:[%s1235_s30 + $0x1e0] sm:$0xff] %v275_v60  ;;  %v403_v60 = vld [vmem:[%s1230_s29 + $0x1f00] sm:$0xff] }
  0x52   : > { %278 = vst [vmem:[%s1235_s30 + $0x1e8] sm:$0xff] %v277_v61  ;;  %v405_v61 = vld [vmem:[%s1230_s29 + $0x1f08] sm:$0xff] }
  0x53   : > { %280 = vst [vmem:[%s1235_s30 + $0x1f0] sm:$0xff] %v279_v62  ;;  %v407_v62 = vld [vmem:[%s1230_s29 + $0x1f10] sm:$0xff] }
  0x54   : > { %282 = vst [vmem:[%s1235_s30 + $0x1f8] sm:$0xff] %v281_v63  ;;  %v409_v63 = vld [vmem:[%s1230_s29 + $0x1f18] sm:$0xff] }
  0x55   : > { %284 = vst [vmem:[%s1235_s30 + $0x200] sm:$0xff] %v283_v0  ;;  %v411_v0 = vld [vmem:[%s1230_s29 + $0x2000] sm:$0xff] }
  0x56   : > { %286 = vst [vmem:[%s1235_s30 + $0x208] sm:$0xff] %v285_v1  ;;  %v413_v1 = vld [vmem:[%s1230_s29 + $0x2008] sm:$0xff] }
  0x57   : > { %288 = vst [vmem:[%s1235_s30 + $0x210] sm:$0xff] %v287_v2  ;;  %v415_v2 = vld [vmem:[%s1230_s29 + $0x2010] sm:$0xff] }
  0x58   : > { %290 = vst [vmem:[%s1235_s30 + $0x218] sm:$0xff] %v289_v3  ;;  %v417_v3 = vld [vmem:[%s1230_s29 + $0x2018] sm:$0xff] }
  0x59   : > { %292 = vst [vmem:[%s1235_s30 + $0x220] sm:$0xff] %v291_v4  ;;  %v419_v4 = vld [vmem:[%s1230_s29 + $0x2100] sm:$0xff] }
  0x5a   : > { %294 = vst [vmem:[%s1235_s30 + $0x228] sm:$0xff] %v293_v5  ;;  %v421_v5 = vld [vmem:[%s1230_s29 + $0x2108] sm:$0xff] }
  0x5b   : > { %296 = vst [vmem:[%s1235_s30 + $0x230] sm:$0xff] %v295_v6  ;;  %v423_v6 = vld [vmem:[%s1230_s29 + $0x2110] sm:$0xff] }
  0x5c   : > { %298 = vst [vmem:[%s1235_s30 + $0x238] sm:$0xff] %v297_v7  ;;  %v425_v7 = vld [vmem:[%s1230_s29 + $0x2118] sm:$0xff] }
  0x5d   : > { %300 = vst [vmem:[%s1235_s30 + $0x240] sm:$0xff] %v299_v8  ;;  %v427_v8 = vld [vmem:[%s1230_s29 + $0x2200] sm:$0xff] }
  0x5e   : > { %302 = vst [vmem:[%s1235_s30 + $0x248] sm:$0xff] %v301_v9  ;;  %v429_v9 = vld [vmem:[%s1230_s29 + $0x2208] sm:$0xff] }
  0x5f   : > { %304 = vst [vmem:[%s1235_s30 + $0x250] sm:$0xff] %v303_v10  ;;  %v431_v10 = vld [vmem:[%s1230_s29 + $0x2210] sm:$0xff] }
  0x60   : > { %306 = vst [vmem:[%s1235_s30 + $0x258] sm:$0xff] %v305_v11  ;;  %v433_v11 = vld [vmem:[%s1230_s29 + $0x2218] sm:$0xff] }
  0x61   : > { %308 = vst [vmem:[%s1235_s30 + $0x260] sm:$0xff] %v307_v12  ;;  %v435_v12 = vld [vmem:[%s1230_s29 + $0x2300] sm:$0xff] }
  0x62   : > { %310 = vst [vmem:[%s1235_s30 + $0x268] sm:$0xff] %v309_v13  ;;  %v437_v13 = vld [vmem:[%s1230_s29 + $0x2308] sm:$0xff] }
  0x63   : > { %312 = vst [vmem:[%s1235_s30 + $0x270] sm:$0xff] %v311_v14  ;;  %v439_v14 = vld [vmem:[%s1230_s29 + $0x2310] sm:$0xff] }
  0x64   : > { %314 = vst [vmem:[%s1235_s30 + $0x278] sm:$0xff] %v313_v15  ;;  %v441_v15 = vld [vmem:[%s1230_s29 + $0x2318] sm:$0xff] }
  0x65   : > { %316 = vst [vmem:[%s1235_s30 + $0x280] sm:$0xff] %v315_v16  ;;  %v443_v16 = vld [vmem:[%s1230_s29 + $0x2400] sm:$0xff] }
  0x66   : > { %318 = vst [vmem:[%s1235_s30 + $0x288] sm:$0xff] %v317_v17  ;;  %v445_v17 = vld [vmem:[%s1230_s29 + $0x2408] sm:$0xff] }
  0x67   : > { %320 = vst [vmem:[%s1235_s30 + $0x290] sm:$0xff] %v319_v18  ;;  %v447_v18 = vld [vmem:[%s1230_s29 + $0x2410] sm:$0xff] }
  0x68   : > { %322 = vst [vmem:[%s1235_s30 + $0x298] sm:$0xff] %v321_v19  ;;  %v449_v19 = vld [vmem:[%s1230_s29 + $0x2418] sm:$0xff] }
  0x69   : > { %324 = vst [vmem:[%s1235_s30 + $0x2a0] sm:$0xff] %v323_v20  ;;  %v451_v20 = vld [vmem:[%s1230_s29 + $0x2500] sm:$0xff] }
  0x6a   : > { %326 = vst [vmem:[%s1235_s30 + $0x2a8] sm:$0xff] %v325_v21  ;;  %v453_v21 = vld [vmem:[%s1230_s29 + $0x2508] sm:$0xff] }
  0x6b   : > { %328 = vst [vmem:[%s1235_s30 + $0x2b0] sm:$0xff] %v327_v22  ;;  %v455_v22 = vld [vmem:[%s1230_s29 + $0x2510] sm:$0xff] }
  0x6c   : > { %330 = vst [vmem:[%s1235_s30 + $0x2b8] sm:$0xff] %v329_v23  ;;  %v457_v23 = vld [vmem:[%s1230_s29 + $0x2518] sm:$0xff] }
  0x6d   : > { %332 = vst [vmem:[%s1235_s30 + $0x2c0] sm:$0xff] %v331_v24 }
  0x6e   : > { %334 = vst [vmem:[%s1235_s30 + $0x2c8] sm:$0xff] %v333_v25 }
  0x6f   : > { %336 = vst [vmem:[%s1235_s30 + $0x2d0] sm:$0xff] %v335_v26 }
  0x70   : > { %338 = vst [vmem:[%s1235_s30 + $0x2d8] sm:$0xff] %v337_v27 }
  0x71   : > { %340 = vst [vmem:[%s1235_s30 + $0x2e0] sm:$0xff] %v339_v28 }
  0x72   : > { %342 = vst [vmem:[%s1235_s30 + $0x2e8] sm:$0xff] %v341_v29 }
  0x73   : > { %344 = vst [vmem:[%s1235_s30 + $0x2f0] sm:$0xff] %v343_v30 }
  0x74   : > { %346 = vst [vmem:[%s1235_s30 + $0x2f8] sm:$0xff] %v345_v31 }
  0x75   : > { %348 = vst [vmem:[%s1235_s30 + $0x300] sm:$0xff] %v347_v32 }
  0x76   : > { %350 = vst [vmem:[%s1235_s30 + $0x308] sm:$0xff] %v349_v33 }
  0x77   : > { %352 = vst [vmem:[%s1235_s30 + $0x310] sm:$0xff] %v351_v34 }
  0x78   : > { %354 = vst [vmem:[%s1235_s30 + $0x318] sm:$0xff] %v353_v35 }
  0x79   : > { %356 = vst [vmem:[%s1235_s30 + $0x320] sm:$0xff] %v355_v36 }
  0x7a   : > { %358 = vst [vmem:[%s1235_s30 + $0x328] sm:$0xff] %v357_v37 }
  0x7b   : > { %360 = vst [vmem:[%s1235_s30 + $0x330] sm:$0xff] %v359_v38 }
  0x7c   : > { %362 = vst [vmem:[%s1235_s30 + $0x338] sm:$0xff] %v361_v39 }
  0x7d   : > { %364 = vst [vmem:[%s1235_s30 + $0x340] sm:$0xff] %v363_v40 }
  0x7e   : > { %366 = vst [vmem:[%s1235_s30 + $0x348] sm:$0xff] %v365_v41 }
  0x7f   : > { %368 = vst [vmem:[%s1235_s30 + $0x350] sm:$0xff] %v367_v42 }
  0x80   : > { %370 = vst [vmem:[%s1235_s30 + $0x358] sm:$0xff] %v369_v43 }
  0x81   : > { %372 = vst [vmem:[%s1235_s30 + $0x360] sm:$0xff] %v371_v44 }
  0x82   : > { %374 = vst [vmem:[%s1235_s30 + $0x368] sm:$0xff] %v373_v45 }
  0x83   : > { %376 = vst [vmem:[%s1235_s30 + $0x370] sm:$0xff] %v375_v46 }
  0x84   : > { %378 = vst [vmem:[%s1235_s30 + $0x378] sm:$0xff] %v377_v47 }
  0x85   : > { %380 = vst [vmem:[%s1235_s30 + $0x380] sm:$0xff] %v379_v48 }
  0x86   : > { %382 = vst [vmem:[%s1235_s30 + $0x388] sm:$0xff] %v381_v49 }
  0x87   : > { %384 = vst [vmem:[%s1235_s30 + $0x390] sm:$0xff] %v383_v50 }
  0x88   : > { %386 = vst [vmem:[%s1235_s30 + $0x398] sm:$0xff] %v385_v51 }
  0x89   : > { %388 = vst [vmem:[%s1235_s30 + $0x3a0] sm:$0xff] %v387_v52 }
  0x8a   : > { %390 = vst [vmem:[%s1235_s30 + $0x3a8] sm:$0xff] %v389_v53 }
  0x8b   : > { %392 = vst [vmem:[%s1235_s30 + $0x3b0] sm:$0xff] %v391_v54 }
  0x8c   : > { %394 = vst [vmem:[%s1235_s30 + $0x3b8] sm:$0xff] %v393_v55 }
  0x8d   : > { %396 = vst [vmem:[%s1235_s30 + $0x3c0] sm:$0xff] %v395_v56 }
  0x8e   : > { %398 = vst [vmem:[%s1235_s30 + $0x3c8] sm:$0xff] %v397_v57 }
  0x8f   : > { %400 = vst [vmem:[%s1235_s30 + $0x3d0] sm:$0xff] %v399_v58 }
  0x90   : > { %402 = vst [vmem:[%s1235_s30 + $0x3d8] sm:$0xff] %v401_v59 }
  0x91   : > { %404 = vst [vmem:[%s1235_s30 + $0x3e0] sm:$0xff] %v403_v60 }
  0x92   : > { %406 = vst [vmem:[%s1235_s30 + $0x3e8] sm:$0xff] %v405_v61 }
  0x93   : > { %408 = vst [vmem:[%s1235_s30 + $0x3f0] sm:$0xff] %v407_v62 }
  0x94   : > { %410 = vst [vmem:[%s1235_s30 + $0x3f8] sm:$0xff] %v409_v63 }
  0x95   : > { %412 = vst [vmem:[%s1235_s30 + $0x400] sm:$0xff] %v411_v0 }
  0x96   : > { %414 = vst [vmem:[%s1235_s30 + $0x408] sm:$0xff] %v413_v1 }
  0x97   : > { %416 = vst [vmem:[%s1235_s30 + $0x410] sm:$0xff] %v415_v2 }
  0x98   : > { %418 = vst [vmem:[%s1235_s30 + $0x418] sm:$0xff] %v417_v3 }
  0x99   : > { %420 = vst [vmem:[%s1235_s30 + $0x420] sm:$0xff] %v419_v4 }
  0x9a   : > { %422 = vst [vmem:[%s1235_s30 + $0x428] sm:$0xff] %v421_v5 }
  0x9b   : > { %424 = vst [vmem:[%s1235_s30 + $0x430] sm:$0xff] %v423_v6 }
  0x9c   : > { %426 = vst [vmem:[%s1235_s30 + $0x438] sm:$0xff] %v425_v7 }
  0x9d   : > { %428 = vst [vmem:[%s1235_s30 + $0x440] sm:$0xff] %v427_v8 }
  0x9e   : > { %430 = vst [vmem:[%s1235_s30 + $0x448] sm:$0xff] %v429_v9 }
  0x9f   : > { %432 = vst [vmem:[%s1235_s30 + $0x450] sm:$0xff] %v431_v10 }
  0xa0   : > { %434 = vst [vmem:[%s1235_s30 + $0x458] sm:$0xff] %v433_v11 }
  0xa1   : > { %436 = vst [vmem:[%s1235_s30 + $0x460] sm:$0xff] %v435_v12 }
  0xa2   : > { %438 = vst [vmem:[%s1235_s30 + $0x468] sm:$0xff] %v437_v13 }
  0xa3   : > { %440 = vst [vmem:[%s1235_s30 + $0x470] sm:$0xff] %v439_v14 }
  0xa4   : > { %442 = vst [vmem:[%s1235_s30 + $0x478] sm:$0xff] %v441_v15 }
  0xa5   : > { %444 = vst [vmem:[%s1235_s30 + $0x480] sm:$0xff] %v443_v16 }
  0xa6   : > { %446 = vst [vmem:[%s1235_s30 + $0x488] sm:$0xff] %v445_v17 }
  0xa7   : > { %448 = vst [vmem:[%s1235_s30 + $0x490] sm:$0xff] %v447_v18 }
  0xa8   : > { %450 = vst [vmem:[%s1235_s30 + $0x498] sm:$0xff] %v449_v19 }
  0xa9   : > { %452 = vst [vmem:[%s1235_s30 + $0x4a0] sm:$0xff] %v451_v20 }
  0xaa   : > { %454 = vst [vmem:[%s1235_s30 + $0x4a8] sm:$0xff] %v453_v21 }
  0xab   : > { %456 = vst [vmem:[%s1235_s30 + $0x4b0] sm:$0xff] %v455_v22 }
  0xac   : > { %458 = vst [vmem:[%s1235_s30 + $0x4b8] sm:$0xff] %v457_v23 }
  0xad PF: > { %p1034_p10 = scmp.ge.s32.totalorder %s1155_s15, 1  ;;  %p471_p11 = scmp.lt.s32.totalorder %s1155_s15, 9 }
  0xaf   : > { %p472_p12 = pnand %p1034_p10, %p471_p11 }
  0xb0   : > { %s1541_s4 = sand.u32 (!%p472_p12), 1, %s1147_s13   ;;  %s1036_s19 = sshll.u32 (!%p472_p12), %s1198_s16, 2 }
  0xb1   : > { %475 = sbr.rel (%p472_p12) target bundleno = 403 (0x193), region = 51  ;;  %p507_p13 = scmp.lt.s32.totalorder (!%p472_p12), %s1036_s19, 31 }
  0xb2   : > { %s1053_s5 = smul.u32 (!%p472_p12), 1216, %s1541_s4  ;;  %s1035_s26 = sshll.u32 (!%p472_p12), %s1541_s4, 5 }
  0xb3   : > { %s504_s27 = scalar_lea.vmem (!%p472_p12), [#allocation3], %s1035_s26  ;;  %s1051_s28 = sshll.u32 (!%p472_p12), %s1198_s16, 5 }
  0xb4   : > { %s1544_s6 = scalar_lea.vmem (!%p472_p12), [#allocation2], %s1053_s5  ;;  %s950_s5 = scalar_lea.hbm (!%p472_p12), %s1773_s3, %s1051_s28 }
  0xb5   : > { %s954_s7 = sshll.u32 (!%p472_p12), %s950_s5, 4  ;;  %s939_s16 = scalar_lea.sflag (!%p472_p12), [#allocation4], %s1541_s4  ;;  %s955_s7 = int_to_ptr.hbm [resolvable:$true] %s954_s7 }
  0xb6   : > { %vm681_vm0 = vcmask 1043456   ;;  %v663_v24 = vld [vmem:[%s1544_s6 + $0x4a0] sm:$0xf]  ;;  %v576_v25 = vld [vmem:[%s1544_s6 + $0x1e8] sm:$0xff]  ;;  %vm677_vm1 = vcmask 359424   ;;  %s1781_s19 = smov (!%p507_p13, %s1036_s19), 31 }
  0xb7   : > { %v659_v26 = vld [vmem:[%s1544_s6 + $0x480] sm:$0xff]  ;;  %1037 = vmatpush.msk.msra.mxu2 %vm681_vm0, %v663_v24  ;;  %754 = vmatpush.msra.mxu3 %v576_v25  ;;  %v572_v27 = vld [vmem:[%s1544_s6 + $0x1c8] sm:$0xff]  ;;  %s509_s25 = scalar_lea.vmem %s1772_s2, %s1781_s19  ;;  %s1107_s8 = sshra.s32 %s955_s7, 4  ;;  %s1108_s8 = int_to_ptr.hbm [resolvable:$true] %s1107_s8 }
  0xb8   : > { %v655_v28 = vld [vmem:[%s1544_s6 + $0x460] sm:$0xff]  ;;  %v568_v29 = vld [vmem:[%s1544_s6 + $0x1a8] sm:$0xff]  ;;  %s1109_s9 = scalar_lea.hbm %s1108_s8, 32  ;;  %s1113_s17 = scalar_lea.hbm %s1773_s3, 256 }
  0xb9   : > { %v575_v30 = vld [vmem:[%s1544_s6 + $0x1e0] sm:$0xff]  ;;  %745 = vmatpush.msra.mxu2 %v659_v26  ;;  %755 = vmatpush.msra.mxu3 %v572_v27  ;;  %v564_v33 = vld [vmem:[%s1544_s6 + $0x188] sm:$0xff]  ;;  %p1110_p0 = scmp.ne.s32.totalorder %s1108_s8, %s1109_s9  ;;  %p1114_p3 = scmp.lt.s32.totalorder %s1108_s8, %s1773_s3 }
  0xba   : > { %v571_v31 = vld [vmem:[%s1544_s6 + $0x1c0] sm:$0xff]  ;;  %694 = vmatpush.msra.mxu0 %v575_v30  ;;  %v560_v38 = vld [vmem:[%s1544_s6 + $0x168] sm:$0xff]  ;;  %v665_v30 = vld [vmem:[%s1544_s6 + $0x4b0] sm:$0xf]  ;;  %p1115_p4 = scmp.lt.s32.totalorder %s1113_s17, %s1109_s9 }
  0xbb   : > { %v651_v32 = vld [vmem:[%s1544_s6 + $0x440] sm:$0xff]  ;;  %746 = vmatpush.msra.mxu2 %v655_v28  ;;  %756 = vmatpush.msra.mxu3 %v568_v29  ;;  %v556_v42 = vld [vmem:[%s1544_s6 + $0x148] sm:$0xff]  ;;  %v1620_v29 = vld [vmem:[%s1770_s0 + $0x10] sm:$0xff]  ;;  %p1111_p1 = pnand %p1110_p0, %p1216_p6 }
  0xbc   : > { %v639_v34 = vld [vmem:[%s1544_s6 + $0x3e0] sm:$0xff]  ;;  %695 = vmatpush.msra.mxu0 %v571_v31  ;;  %v640_v43 = vld [vmem:[%s1544_s6 + $0x3e8] sm:$0xff]  ;;  %p1116_p5 = por %p1115_p4, %p1114_p3 }
  0xbd   : > { %v567_v35 = vld [vmem:[%s1544_s6 + $0x1a0] sm:$0xff]  ;;  %714 = vmatpush.msra.mxu1 %v639_v34  ;;  %747 = vmatpush.msra.mxu2 %v651_v32  ;;  %v552_v45 = vld [vmem:[%s1544_s6 + $0x128] sm:$0xff]  ;;  %p1112_p2 = pneg %p1111_p1 }
  0xbe   : > { %v635_v36 = vld [vmem:[%s1544_s6 + $0x3c0] sm:$0xff]  ;;  %757 = vmatpush.msra.mxu3 %v564_v33  ;;  %696 = vmatpush.msra.mxu0 %v567_v35  ;;  %v636_v47 = vld [vmem:[%s1544_s6 + $0x3c8] sm:$0xff] }
  0xbf   : > { %v647_v37 = vld [vmem:[%s1544_s6 + $0x420] sm:$0xff]  ;;  %715 = vmatpush.msra.mxu1 %v635_v36  ;;  %v548_v49 = vld [vmem:[%s1544_s6 + $0x108] sm:$0xff]  ;;  %p1117_p7 = pnand %p1116_p5, %p1112_p2 }
  0xc0   : > { %v563_v39 = vld [vmem:[%s1544_s6 + $0x180] sm:$0xff]  ;;  %748 = vmatpush.msra.mxu2 %v647_v37  ;;  %758 = vmatpush.msra.mxu3 %v560_v38  ;;  %v632_v51 = vld [vmem:[%s1544_s6 + $0x3a8] sm:$0xff]  ;;  %v577_v37 = vld [vmem:[%s1544_s6 + $0x1f0] sm:$0xff] }
  0xc1   : > { %v631_v40 = vld [vmem:[%s1544_s6 + $0x3a0] sm:$0xff]  ;;  %697 = vmatpush.msra.mxu0 %v563_v39  ;;  %v544_v53 = vld [vmem:[%s1544_s6 + $0xe8] sm:$0xff]  ;;  %v661_v38 = vld [vmem:[%s1544_s6 + $0x490] sm:$0xff] }
  0xc2   : > { %v643_v41 = vld [vmem:[%s1544_s6 + $0x400] sm:$0xff]  ;;  %716 = vmatpush.msra.mxu1 %v631_v40  ;;  %759 = vmatpush.msra.mxu3 %v556_v42  ;;  %v628_v55 = vld [vmem:[%s1544_s6 + $0x388] sm:$0xff]  ;;  %v578_v42 = vld [vmem:[%s1544_s6 + $0x1f8] sm:$0xff] }
  0xc3   : > { %v559_v44 = vld [vmem:[%s1544_s6 + $0x160] sm:$0xff]  ;;  %749 = vmatpush.msra.mxu2 %v643_v41  ;;  %v540_v57 = vld [vmem:[%s1544_s6 + $0xc8] sm:$0xff]  ;;  %v641_v41 = vld [vmem:[%s1544_s6 + $0x3f0] sm:$0xff] }
  0xc4   : > { %v627_v46 = vld [vmem:[%s1544_s6 + $0x380] sm:$0xff]  ;;  %698 = vmatpush.msra.mxu0 %v559_v44  ;;  %760 = vmatpush.msra.mxu3 %v552_v45  ;;  %v624_v59 = vld [vmem:[%s1544_s6 + $0x368] sm:$0xff]  ;;  %v657_v44 = vld [vmem:[%s1544_s6 + $0x470] sm:$0xff] }
  0xc5   : > { %v555_v48 = vld [vmem:[%s1544_s6 + $0x140] sm:$0xff]  ;;  %774 = vmatpush.msrb.mxu2 %v640_v43  ;;  %717 = vmatpush.msra.mxu1 %v627_v46  ;;  %v536_v61 = vld [vmem:[%s1544_s6 + $0xa8] sm:$0xff]  ;;  %v573_v43 = vld [vmem:[%s1544_s6 + $0x1d0] sm:$0xff] }
  0xc6   : > { %v623_v50 = vld [vmem:[%s1544_s6 + $0x360] sm:$0xff]  ;;  %699 = vmatpush.msra.mxu0 %v555_v48  ;;  %761 = vmatpush.msra.mxu3 %v548_v49  ;;  %v620_v63 = vld [vmem:[%s1544_s6 + $0x348] sm:$0xff]  ;;  %v637_v45 = vld [vmem:[%s1544_s6 + $0x3d0] sm:$0xff] }
  0xc7   : > { %v551_v52 = vld [vmem:[%s1544_s6 + $0x120] sm:$0xff]  ;;  %775 = vmatpush.msrb.mxu2 %v636_v47  ;;  %718 = vmatpush.msra.mxu1 %v623_v50  ;;  %v532_v1 = vld [vmem:[%s1544_s6 + $0x88] sm:$0xff]  ;;  %v574_v46 = vld [vmem:[%s1544_s6 + $0x1d8] sm:$0xff] }
  0xc8   : > { %v619_v54 = vld [vmem:[%s1544_s6 + $0x340] sm:$0xff]  ;;  %700 = vmatpush.msra.mxu0 %v551_v52  ;;  %762 = vmatpush.msra.mxu3 %v544_v53  ;;  %v616_v3 = vld [vmem:[%s1544_s6 + $0x328] sm:$0xff]  ;;  %v569_v47 = vld [vmem:[%s1544_s6 + $0x1b0] sm:$0xff] }
  0xc9   : > { %v547_v56 = vld [vmem:[%s1544_s6 + $0x100] sm:$0xff]  ;;  %776 = vmatpush.msrb.mxu2 %v632_v51  ;;  %719 = vmatpush.msra.mxu1 %v619_v54  ;;  %v528_v5 = vld [vmem:[%s1544_s6 + $0x68] sm:$0xff]  ;;  %v653_v48 = vld [vmem:[%s1544_s6 + $0x450] sm:$0xff] }
  0xca   : > { %v615_v58 = vld [vmem:[%s1544_s6 + $0x320] sm:$0xff]  ;;  %701 = vmatpush.msra.mxu0 %v547_v56  ;;  %763 = vmatpush.msra.mxu3 %v540_v57  ;;  %v612_v7 = vld [vmem:[%s1544_s6 + $0x308] sm:$0xff]  ;;  %v633_v50 = vld [vmem:[%s1544_s6 + $0x3b0] sm:$0xff] }
  0xcb   : > { %v543_v60 = vld [vmem:[%s1544_s6 + $0xe0] sm:$0xff]  ;;  %777 = vmatpush.msrb.mxu2 %v628_v55  ;;  %720 = vmatpush.msra.mxu1 %v615_v58  ;;  %v524_v9 = vld [vmem:[%s1544_s6 + $0x48] sm:$0xff]  ;;  %v570_v51 = vld [vmem:[%s1544_s6 + $0x1b8] sm:$0xff] }
  0xcc   : > { %v611_v62 = vld [vmem:[%s1544_s6 + $0x300] sm:$0xff]  ;;  %702 = vmatpush.msra.mxu0 %v543_v60  ;;  %764 = vmatpush.msra.mxu3 %v536_v61  ;;  %v608_v11 = vld [vmem:[%s1544_s6 + $0x2e8] sm:$0xff]  ;;  %v565_v52 = vld [vmem:[%s1544_s6 + $0x190] sm:$0xff] }
  0xcd   : > { %v539_v0 = vld [vmem:[%s1544_s6 + $0xc0] sm:$0xff]  ;;  %778 = vmatpush.msrb.mxu2 %v624_v59  ;;  %721 = vmatpush.msra.mxu1 %v611_v62  ;;  %v520_v13 = vld [vmem:[%s1544_s6 + $0x28] sm:$0xff]  ;;  %v649_v53 = vld [vmem:[%s1544_s6 + $0x430] sm:$0xff] }
  0xce   : > { %v607_v2 = vld [vmem:[%s1544_s6 + $0x2e0] sm:$0xff]  ;;  %703 = vmatpush.msra.mxu0 %v539_v0  ;;  %765 = vmatpush.msra.mxu3 %v532_v1  ;;  %v604_v15 = vld [vmem:[%s1544_s6 + $0x2c8] sm:$0xff]  ;;  %v629_v54 = vld [vmem:[%s1544_s6 + $0x390] sm:$0xff] }
  0xcf   : > { %v535_v4 = vld [vmem:[%s1544_s6 + $0xa0] sm:$0xff]  ;;  %779 = vmatpush.msrb.mxu2 %v620_v63  ;;  %722 = vmatpush.msra.mxu1 %v607_v2  ;;  %v516_v17 = vld [vmem:[%s1544_s6 + $0x8] sm:$0xff]  ;;  %v566_v55 = vld [vmem:[%s1544_s6 + $0x198] sm:$0xff] }
  0xd0   : > { %v603_v6 = vld [vmem:[%s1544_s6 + $0x2c0] sm:$0xff]  ;;  %704 = vmatpush.msra.mxu0 %v535_v4  ;;  %766 = vmatpush.msra.mxu3 %v528_v5  ;;  %v600_v19 = vld [vmem:[%s1544_s6 + $0x2a8] sm:$0xff]  ;;  %v561_v56 = vld [vmem:[%s1544_s6 + $0x170] sm:$0xff] }
  0xd1   : > { %v531_v8 = vld [vmem:[%s1544_s6 + $0x80] sm:$0xff]  ;;  %780 = vmatpush.msrb.mxu2 %v616_v3  ;;  %723 = vmatpush.msra.mxu1 %v603_v6  ;;  %v664_v20 = vld [vmem:[%s1544_s6 + $0x4a8] sm:$0xf]  ;;  %v645_v57 = vld [vmem:[%s1544_s6 + $0x410] sm:$0xff] }
  0xd2   : > { %v599_v10 = vld [vmem:[%s1544_s6 + $0x2a0] sm:$0xff]  ;;  %705 = vmatpush.msra.mxu0 %v531_v8  ;;  %767 = vmatpush.msra.mxu3 %v524_v9  ;;  %v596_v23 = vld [vmem:[%s1544_s6 + $0x288] sm:$0xff]  ;;  %v625_v58 = vld [vmem:[%s1544_s6 + $0x370] sm:$0xff] }
  0xd3   : > { %v527_v12 = vld [vmem:[%s1544_s6 + $0x60] sm:$0xff]  ;;  %781 = vmatpush.msrb.mxu2 %v612_v7  ;;  %724 = vmatpush.msra.mxu1 %v599_v10  ;;  %v660_v24 = vld [vmem:[%s1544_s6 + $0x488] sm:$0xff]  ;;  %v562_v59 = vld [vmem:[%s1544_s6 + $0x178] sm:$0xff] }
  0xd4   : > { %v595_v14 = vld [vmem:[%s1544_s6 + $0x280] sm:$0xff]  ;;  %706 = vmatpush.msra.mxu0 %v527_v12  ;;  %768 = vmatpush.msra.mxu3 %v520_v13  ;;  %v592_v27 = vld [vmem:[%s1544_s6 + $0x268] sm:$0xff]  ;;  %v642_v60 = vld [vmem:[%s1544_s6 + $0x3f8] sm:$0xff] }
  0xd5   : > { %v523_v16 = vld [vmem:[%s1544_s6 + $0x40] sm:$0xff]  ;;  %782 = vmatpush.msrb.mxu2 %v608_v11  ;;  %725 = vmatpush.msra.mxu1 %v595_v14  ;;  %v656_v28 = vld [vmem:[%s1544_s6 + $0x468] sm:$0xff]  ;;  %v557_v61 = vld [vmem:[%s1544_s6 + $0x150] sm:$0xff] }
  0xd6   : > { %v591_v18 = vld [vmem:[%s1544_s6 + $0x260] sm:$0xff]  ;;  %707 = vmatpush.msra.mxu0 %v523_v16  ;;  %769 = vmatpush.msra.mxu3 %v516_v17  ;;  %v588_v31 = vld [vmem:[%s1544_s6 + $0x248] sm:$0xff]  ;;  %v621_v62 = vld [vmem:[%s1544_s6 + $0x350] sm:$0xff] }
  0xd7   : > { %783 = vmatpush.msrb.mxu2 %v604_v15  ;;  %v519_v21 = vld [vmem:[%s1544_s6 + $0x20] sm:$0xff]  ;;  %726 = vmatpush.msra.mxu1 %v591_v18  ;;  %v652_v32 = vld [vmem:[%s1544_s6 + $0x448] sm:$0xff]  ;;  %v558_v63 = vld [vmem:[%s1544_s6 + $0x158] sm:$0xff] }
  0xd8   : > { %v587_v22 = vld [vmem:[%s1544_s6 + $0x240] sm:$0xff]  ;;  %1039 = vmatpush.msk.msrb.mxu3 %vm681_vm0, %v664_v20  ;;  %708 = vmatpush.msra.mxu0 %v519_v21  ;;  %v584_v35 = vld [vmem:[%s1544_s6 + $0x228] sm:$0xff]  ;;  %v638_v0 = vld [vmem:[%s1544_s6 + $0x3d8] sm:$0xff] }
  0xd9   : > { %784 = vmatpush.msrb.mxu2 %v600_v19  ;;  %v515_v25 = vld [vmem:[%s1544_s6] sm:$0xff]  ;;  %727 = vmatpush.msra.mxu1 %v587_v22  ;;  %v648_v36 = vld [vmem:[%s1544_s6 + $0x428] sm:$0xff]  ;;  %v553_v1 = vld [vmem:[%s1544_s6 + $0x130] sm:$0xff] }
  0xda   : > { %v583_v26 = vld [vmem:[%s1544_s6 + $0x220] sm:$0xff]  ;;  %805 = vmatpush.msrb.mxu3 %v660_v24  ;;  %709 = vmatpush.msra.mxu0 %v515_v25  ;;  %v580_v39 = vld [vmem:[%s1544_s6 + $0x208] sm:$0xff]  ;;  %v617_v2 = vld [vmem:[%s1544_s6 + $0x330] sm:$0xff] }
  0xdb   : > { %785 = vmatpush.msrb.mxu2 %v596_v23  ;;  %728 = vmatpush.msra.mxu1 %v583_v26  ;;  %v579_v33 = vld [vmem:[%s1544_s6 + $0x200] sm:$0xff]  ;;  %v644_v40 = vld [vmem:[%s1544_s6 + $0x408] sm:$0xff]  ;;  %v554_v3 = vld [vmem:[%s1544_s6 + $0x138] sm:$0xff] }
  0xdc   : > { %806 = vmatpush.msrb.mxu3 %v656_v28  ;;  %v1629_v34 = vld [vmem:[%s1770_s0] sm:$0xff]  ;;  %1038 = vmatmul.msk.f32.vlgmr.msra.gmra.mxu2 %vm677_vm1, %v1620_v29  ;;  %v1652_v49 = vld [vmem:[%s1770_s0 + $0x8] sm:$0xff]  ;;  %v634_v4 = vld [vmem:[%s1544_s6 + $0x3b8] sm:$0xff] }
  0xdd   : > { %786 = vmatpush.msrb.mxu2 %v592_v27  ;;  %1041 = vmatpush.msk.msrb.mxu0 %vm681_vm0, %v665_v30  ;;  %v549_v5 = vld [vmem:[%s1544_s6 + $0x110] sm:$0xff]  ;;  %v550_v7 = vld [vmem:[%s1544_s6 + $0x118] sm:$0xff] }
  0xde   : > { %807 = vmatpush.msrb.mxu3 %v652_v32  ;;  %729 = vmatpush.msra.mxu1 %v579_v33  ;;  %v613_v6 = vld [vmem:[%s1544_s6 + $0x310] sm:$0xff]  ;;  %v630_v8 = vld [vmem:[%s1544_s6 + $0x398] sm:$0xff] }
  0xdf   : > { %787 = vmatpush.msrb.mxu2 %v588_v31  ;;  %770 = vmatmul.f32.vlgmr.msra.gmra.mxu3 %v1629_v34  ;;  %v545_v9 = vld [vmem:[%s1544_s6 + $0xf0] sm:$0xff]  ;;  %v546_v11 = vld [vmem:[%s1544_s6 + $0xf8] sm:$0xff] }
  0xe0   : > { %808 = vmatpush.msrb.mxu3 %v648_v36  ;;  %814 = vmatpush.msrb.mxu1 %v577_v37  ;;  %v609_v10 = vld [vmem:[%s1544_s6 + $0x2f0] sm:$0xff]  ;;  %v626_v12 = vld [vmem:[%s1544_s6 + $0x378] sm:$0xff] }
  0xe1   : > { %788 = vmatpush.msrb.mxu2 %v584_v35  ;;  %865 = vmatpush.msrb.mxu0 %v661_v38  ;;  %v541_v13 = vld [vmem:[%s1544_s6 + $0xd0] sm:$0xff]  ;;  %v542_v15 = vld [vmem:[%s1544_s6 + $0xd8] sm:$0xff] }
  0xe2   : > { %809 = vmatpush.msrb.mxu3 %v644_v40  ;;  %815 = vmatpush.msrb.mxu1 %v573_v43  ;;  %v605_v14 = vld [vmem:[%s1544_s6 + $0x2d0] sm:$0xff]  ;;  %v622_v16 = vld [vmem:[%s1544_s6 + $0x358] sm:$0xff] }
  0xe3   : > { %789 = vmatpush.msrb.mxu2 %v580_v39  ;;  %866 = vmatpush.msrb.mxu0 %v657_v44  ;;  %v537_v17 = vld [vmem:[%s1544_s6 + $0xb0] sm:$0xff]  ;;  %v538_v19 = vld [vmem:[%s1544_s6 + $0xb8] sm:$0xff] }
  0xe4   : > { %834 = vmatpush.msra.mxu3 %v641_v41  ;;  %710 = vmatmul.f32.vlgmr.msra.gmra.mxu0 %v1629_v34  ;;  %v601_v18 = vld [vmem:[%s1544_s6 + $0x2b0] sm:$0xff]  ;;  %v618_v20 = vld [vmem:[%s1544_s6 + $0x338] sm:$0xff] }
  0xe5   : > { %874 = vmatpush.msra.mxu2 %v578_v42  ;;  %816 = vmatpush.msrb.mxu1 %v569_v47  ;;  %v533_v21 = vld [vmem:[%s1544_s6 + $0x90] sm:$0xff]  ;;  %v534_v23 = vld [vmem:[%s1544_s6 + $0x98] sm:$0xff] }
  0xe6   : > { %835 = vmatpush.msra.mxu3 %v637_v45  ;;  %867 = vmatpush.msrb.mxu0 %v653_v48  ;;  %v597_v22 = vld [vmem:[%s1544_s6 + $0x290] sm:$0xff]  ;;  %v614_v24 = vld [vmem:[%s1544_s6 + $0x318] sm:$0xff] }
  0xe7   : > { %875 = vmatpush.msra.mxu2 %v574_v46  ;;  %730 = vmatmul.f32.vlgmr.msra.gmra.mxu1 %v1652_v49  ;;  %v529_v25 = vld [vmem:[%s1544_s6 + $0x70] sm:$0xff]  ;;  %v530_v27 = vld [vmem:[%s1544_s6 + $0x78] sm:$0xff] }
  0xe8   : > { %790 = vmatmul.f32.vlgmr.msrb.gmra.mxu2 %v1652_v49  ;;  %836 = vmatpush.msra.mxu3 %v633_v50  ;;  %v593_v26 = vld [vmem:[%s1544_s6 + $0x270] sm:$0xff]  ;;  %v610_v28 = vld [vmem:[%s1544_s6 + $0x2f8] sm:$0xff] }
  0xe9   : > { %876 = vmatpush.msra.mxu2 %v570_v51  ;;  %817 = vmatpush.msrb.mxu1 %v565_v52  ;;  %v525_v30 = vld [vmem:[%s1544_s6 + $0x50] sm:$0xff]  ;;  %v526_v32 = vld [vmem:[%s1544_s6 + $0x58] sm:$0xff] }
  0xea   : > { %868 = vmatpush.msrb.mxu0 %v649_v53  ;;  %1040 = vmatmul.msk.f32.vlgmr.msrb.gmra.mxu3 %vm677_vm1, %v1620_v29  ;;  %v589_v31 = vld [vmem:[%s1544_s6 + $0x250] sm:$0xff]  ;;  %v606_v33 = vld [vmem:[%s1544_s6 + $0x2d8] sm:$0xff] }
  0xeb   : > { %837 = vmatpush.msra.mxu3 %v629_v54  ;;  %877 = vmatpush.msra.mxu2 %v566_v55  ;;  %v521_v35 = vld [vmem:[%s1544_s6 + $0x30] sm:$0xff]  ;;  %v522_v37 = vld [vmem:[%s1544_s6 + $0x38] sm:$0xff] }
  0xec   : > { %818 = vmatpush.msrb.mxu1 %v561_v56  ;;  %869 = vmatpush.msrb.mxu0 %v645_v57  ;;  %v585_v36 = vld [vmem:[%s1544_s6 + $0x230] sm:$0xff]  ;;  %v602_v38 = vld [vmem:[%s1544_s6 + $0x2b8] sm:$0xff] }
  0xed   : > { %838 = vmatpush.msra.mxu3 %v625_v58  ;;  %878 = vmatpush.msra.mxu2 %v562_v59  ;;  %v517_v39 = vld [vmem:[%s1544_s6 + $0x10] sm:$0xff]  ;;  %v518_v41 = vld [vmem:[%s1544_s6 + $0x18] sm:$0xff] }
  0xee   : > { %894 = vmatpush.msra.mxu0 %v642_v60  ;;  %819 = vmatpush.msrb.mxu1 %v557_v61  ;;  %v581_v40 = vld [vmem:[%s1544_s6 + $0x210] sm:$0xff]  ;;  %v598_v42 = vld [vmem:[%s1544_s6 + $0x298] sm:$0xff] }
  0xef   : > { %839 = vmatpush.msra.mxu3 %v621_v62  ;;  %879 = vmatpush.msra.mxu2 %v558_v63  ;;  %v666_v43 = vld [vmem:[%s1544_s6 + $0x4b8] sm:$0xf] }
  0xf0   : > { %895 = vmatpush.msra.mxu0 %v638_v0  ;;  %820 = vmatpush.msrb.mxu1 %v553_v1  ;;  %v594_v44 = vld [vmem:[%s1544_s6 + $0x278] sm:$0xff] }
  0xf1   : > { %840 = vmatpush.msra.mxu3 %v617_v2  ;;  %880 = vmatpush.msra.mxu2 %v554_v3  ;;  %v662_v45 = vld [vmem:[%s1544_s6 + $0x498] sm:$0xff] }
  0xf2   : > { %896 = vmatpush.msra.mxu0 %v634_v4  ;;  %821 = vmatpush.msrb.mxu1 %v549_v5  ;;  %v590_v46 = vld [vmem:[%s1544_s6 + $0x258] sm:$0xff] }
  0xf3   : > { %841 = vmatpush.msra.mxu3 %v613_v6  ;;  %881 = vmatpush.msra.mxu2 %v550_v7  ;;  %v658_v47 = vld [vmem:[%s1544_s6 + $0x478] sm:$0xff] }
  0xf4   : > { %897 = vmatpush.msra.mxu0 %v630_v8  ;;  %822 = vmatpush.msrb.mxu1 %v545_v9  ;;  %v586_v48 = vld [vmem:[%s1544_s6 + $0x238] sm:$0xff] }
  0xf5   : > { %842 = vmatpush.msra.mxu3 %v609_v10  ;;  %882 = vmatpush.msra.mxu2 %v546_v11  ;;  %v654_v50 = vld [vmem:[%s1544_s6 + $0x458] sm:$0xff] }
  0xf6   : > { %898 = vmatpush.msra.mxu0 %v626_v12  ;;  %823 = vmatpush.msrb.mxu1 %v541_v13  ;;  %v582_v51 = vld [vmem:[%s1544_s6 + $0x218] sm:$0xff] }
  0xf7   : > { %843 = vmatpush.msra.mxu3 %v605_v14  ;;  %883 = vmatpush.msra.mxu2 %v542_v15  ;;  %v650_v52 = vld [vmem:[%s1544_s6 + $0x438] sm:$0xff] }
  0xf8   : > { %899 = vmatpush.msra.mxu0 %v622_v16  ;;  %824 = vmatpush.msrb.mxu1 %v537_v17  ;;  %v646_v53 = vld [vmem:[%s1544_s6 + $0x418] sm:$0xff]  ;;  %s952_s6 = sshll.u32 %s504_s27, 4  ;;  %s953_s6 = int_to_ptr.vmem [resolvable:$true] %s952_s6 }
  0xf9   : > { %844 = vmatpush.msra.mxu3 %v601_v18  ;;  %884 = vmatpush.msra.mxu2 %v538_v19 }
  0xfa   : > { %900 = vmatpush.msra.mxu0 %v618_v20  ;;  %825 = vmatpush.msrb.mxu1 %v533_v21 }
  0xfb   : > { %845 = vmatpush.msra.mxu3 %v597_v22  ;;  %885 = vmatpush.msra.mxu2 %v534_v23 }
  0xfc   : > { %901 = vmatpush.msra.mxu0 %v614_v24  ;;  %826 = vmatpush.msrb.mxu1 %v529_v25 }
  0xfd   : > { %846 = vmatpush.msra.mxu3 %v593_v26  ;;  %886 = vmatpush.msra.mxu2 %v530_v27 }
  0xfe   : > { %902 = vmatpush.msra.mxu0 %v610_v28  ;;  %827 = vmatpush.msrb.mxu1 %v525_v30 }
  0xff   : > { %847 = vmatpush.msra.mxu3 %v589_v31  ;;  %887 = vmatpush.msra.mxu2 %v526_v32 }
 0x100   : > { %903 = vmatpush.msra.mxu0 %v606_v33  ;;  %828 = vmatpush.msrb.mxu1 %v521_v35 }
 0x101   : > { %848 = vmatpush.msra.mxu3 %v585_v36  ;;  %888 = vmatpush.msra.mxu2 %v522_v37 }
 0x102   : > { %904 = vmatpush.msra.mxu0 %v602_v38  ;;  %829 = vmatpush.msrb.mxu1 %v517_v39 }
 0x103   : > { %849 = vmatpush.msra.mxu3 %v581_v40  ;;  %889 = vmatpush.msra.mxu2 %v518_v41 }
 0x104   : > { %905 = vmatpush.msra.mxu0 %v598_v42  ;;  %1043 = vmatpush.msk.msra.mxu1 %vm681_vm0, %v666_v43 }
 0x105   : > { %850 = vmatmul.f32.vlgmr.msra.gmra.mxu3 %v1652_v49  ;;  %1042 = vmatmul.msk.f32.vlgmr.msrb.gmra.mxu0 %vm677_vm1, %v1620_v29 }
 0x106   : > { %890 = vmatmul.f32.vlgmr.msra.gmra.mxu2 %v1629_v34  ;;  %906 = vmatpush.msra.mxu0 %v594_v44 }
 0x107   : > { %925 = vmatpush.msra.mxu1 %v662_v45 }
 0x108   : > { %830 = vmatmul.f32.vlgmr.msrb.gmra.mxu1 %v1629_v34  ;;  %907 = vmatpush.msra.mxu0 %v590_v46  ;;  %v667_v34 = vld [vmem:[%s509_s25] sm:$0xf] }
 0x109   : > { %926 = vmatpush.msra.mxu1 %v658_v47  ;;  %v669_v54 = vperm.slane %v667_v34, 0  ;;  %v670_v59 = vperm.slane %v667_v34, 1  ;;  %v671_v3 = vperm.slane %v667_v34, 2  ;;  %v672_v5 = vperm.slane %v667_v34, 3 }
 0x10a   : > { %908 = vmatpush.msra.mxu0 %v586_v48 }
 0x10b   : > { %927 = vmatpush.msra.mxu1 %v654_v50 }
 0x10c   : > { %909 = vmatpush.msra.mxu0 %v582_v51 }
 0x10d   : > { %928 = vmatpush.msra.mxu1 %v650_v52  ;;  %910 = vmatmul.f32.vlgmr.msra.gmra.mxu0 %v1652_v49 }
 0x10f   : > { %929 = vmatpush.msra.mxu1 %v646_v53 }
 0x110   : > { %1044 = vmatmul.msk.f32.vlgmr.msra.gmra.mxu1 %vm677_vm1, %v1620_v29 }
 0x15f   : > { %v751_v55 = vpop.f32.mrf.mxu2 }
 0x161   : > { %v711_v56 = vpop.f32.mrf.mxu0 }
 0x162   : > { %v712_v57 = vadd.f32 %v711_v56, %v669_v54  ;;  %v771_v58 = vpop.f32.mrf.mxu3 }
 0x163   : > { %v772_v29 = vadd.f32 %v771_v58, %v670_v59 }
 0x164   : > { %v731_v49 = vpop.f32.mrf.mxu1 }
 0x165   : > { %v732_v60 = vadd.f32 %v731_v49, %v712_v57 }
 0x167   : > { %v752_v61 = vadd.f32 %v751_v55, %v732_v60 }
 0x169   : > { %934 = vst [vmem:[%s504_s27] sm:$0xff] %v752_v61 }
 0x16b   : > { %v791_v62 = vpop.f32.mrf.mxu2 }
 0x16c   : > { %v792_v63 = vadd.f32 %v791_v62, %v772_v29 }
 0x16d   : > { %v811_v0 = vpop.f32.mrf.mxu3 }
 0x16e   : > { %v812_v1 = vadd.f32 %v811_v0, %v792_v63 }
 0x170   : > { %935 = vst [vmem:[%s504_s27 + $0x8] sm:$0xff] %v812_v1 }
 0x182   : > { %v871_v2 = vpop.f32.mrf.mxu0 }
 0x185   : > { %v831_v4 = vpop.f32.mrf.mxu1 }
 0x186   : > { %v832_v6 = vadd.f32 %v831_v4, %v671_v3 }
 0x188   : > { %v851_v7 = vpop.f32.mrf.mxu3 }
 0x189   : > { %v852_v8 = vadd.f32 %v851_v7, %v832_v6  ;;  %v891_v9 = vpop.f32.mrf.mxu2 }
 0x18a   : > { %v892_v10 = vadd.f32 %v891_v9, %v672_v5  ;;  %v911_v11 = vpop.f32.mrf.mxu0 }
 0x18b   : > { %v872_v12 = vadd.f32 %v871_v2, %v852_v8 }
 0x18c   : > { %v912_v13 = vadd.f32 %v911_v11, %v892_v10 }
 0x18d   : > { %936 = vst [vmem:[%s504_s27 + $0x10] sm:$0xff] %v872_v12  ;;  %v931_v14 = vpop.f32.mrf.mxu1 }
 0x18e   : > { %v932_v15 = vadd.f32 %v931_v14, %v912_v13 }
 0x190   : > { %937 = vst [vmem:[%s504_s27 + $0x18] sm:$0xff] %v932_v15 }
 0x191   : > { %1120 = shalt.err (!%p1117_p7)
}
 0x192   : > { %1054 = dma.vmem_to_hbm [thread:$0]  (%p1216_p6), %s953_s6, 512, %s955_s7, %s939_s16  }
 0x193 PF: > { %p1060_p9 = scmp.ge.s32.totalorder %s1155_s15, 2  ;;  %s966_s4 = sand.u32 1, %s1143_s12  }
 0x194   : > { %s967_s24 = scalar_lea.sflag [#allocation4], %s966_s4 }
 0x195   : > { %p1057_p10 = pnand %p1060_p9, %p1220_p8 }
 0x197   : > { %p1058_p11 = pneg %p1057_p10 }
 0x199   : > { %1138 = dma.done.wait (%p1058_p11), %s967_s24, 512  }
 0x19a   : > { %1140 = vsyncadd (%p1058_p11), %s967_s24, 4294966784  ;;  %p13_p12 = scmp.ge.s32.totalorder %s1202_s18, 10   ;;  %s1776_s12 = smov %s1147_s13 }
 0x19b   : > { %s1777_s13 = smov %s1151_s14  ;;  %s1778_s14 = smov %s1214_s21 }
 0x19c   : > { %s1779_s15 = smov %s1202_s18  ;;  %15 = sbr.rel (!%p13_p12) target bundleno = 3 (0x3), region = 98 }
 0x1a1   :  { %973 = vsyncpa [#allocation4], 1 }
 0x1a2   :  { %975 = vsyncpa [#allocation4 + $0x1], 1 }

</bundles_post_ra>
